<compile_context>
chip_gen: v6e
topology: v6e:2x2x1
jax: 0.10.0
libtpu: 0.0.40
codegen_flags: <defaults>
</compile_context>

<pallas_src>
import functools

import jax
import jax.numpy as jnp
from jax.experimental import pallas as pl
from jax.experimental.pallas import tpu as pltpu


def _mp_attn_kernel(q_ref, k_ref, v_ref, m_ref, out_ref, attn_ref, *,
                    inv_temp, num_masks):
    """One grid step = TB heads; all K masks handled in a static in-kernel loop.

    q_ref:    (TB, Lq, D)
    k_ref:    (TB, Lk, D)
    v_ref:    (TB, Lk, D)
    m_ref:    (K,  Lq, Lk)   (same block every grid step -> stays resident)
    out_ref:  (K,  TB, Lq, D)
    attn_ref: (TB, Lq, Lk)
    """
    q = q_ref[...]
    k = k_ref[...]
    v = v_ref[...]

    # QK^T: contract on D, batch over heads -- MXU consumes k directly, no
    # explicit transpose.  bf16 operands, f32 accumulation.
    scores = jax.lax.dot_general(
        q.astype(jnp.bfloat16), k.astype(jnp.bfloat16),
        dimension_numbers=(((2,), (2,)), ((0,), (0,))),
        preferred_element_type=jnp.float32) * inv_temp          # (TB, Lq, Lk) f32

    # Raw pre-mask scores: written exactly once per head block.
    attn_ref[...] = scores.astype(attn_ref.dtype)

    # Shared numerically-stable exp (computed once, reused for all K masks).
    row_max = jnp.max(scores, axis=-1, keepdims=True)
    e = jnp.exp(scores - row_max)                               # (TB, Lq, Lk) f32
    e_sum = jnp.sum(e, axis=-1, keepdims=True)                  # (TB, Lq, 1)

    v_bf = v.astype(jnp.bfloat16)

    for ki in range(num_masks):                                 # static unroll (K small)
        m = m_ref[ki]                                           # (Lq, Lk), 1=keep 0=mask
        me = e * m                                              # multiplicative masking
        m_sum = jnp.sum(me, axis=-1, keepdims=True)             # (TB, Lq, 1)
        # Fully-masked rows: reference's additive -1e4 reduces to a plain
        # softmax over raw scores (shift invariance) -> fall back to e/e_sum.
        valid = m_sum > 0.0
        num = jnp.where(valid, me, e)
        den = jnp.where(valid, m_sum, e_sum)
        p = num * pl.reciprocal(den, approx=True)               # EUP vrcp
        # P @ V: batch over heads, contract on Lk.  bf16 operands, f32 acc.
        out = jax.lax.dot_general(
            p.astype(jnp.bfloat16), v_bf,
            dimension_numbers=(((2,), (1,)), ((0,), (0,))),
            preferred_element_type=jnp.float32)                 # (TB, Lq, D)
        out_ref[ki] = out.astype(out_ref.dtype)


def _pick_head_block(bh, max_tb=8):
    """Largest divisor of bh <= max_tb, preferring >= 2 grid steps (megacore)."""
    divisors = [d for d in range(1, min(bh, max_tb) + 1) if bh % d == 0]
    multi_step = [d for d in divisors if bh // d >= 2]
    return max(multi_step) if multi_step else max(divisors)


def mp_scaled_dot_product_attention(q, k, v, mask, temperature, block_heads=None):
    """q,k,v: [B, H, L, D] float32; mask: [K, Lq, Lk] (1=keep, 0=mask).

    Returns (output [K, B, H, Lq, D], attn [B, H, Lq, Lk]). Dropout = identity.
    """
    B, H, Lq, D = q.shape
    Lk = k.shape[2]
    K = mask.shape[0]
    BH = B * H

    qf = q.reshape(BH, Lq, D)
    kf = k.reshape(BH, Lk, D)
    vf = v.reshape(BH, Lk, D)
    maskf = mask.astype(jnp.float32)

    tb = block_heads if block_heads is not None else _pick_head_block(BH)
    assert BH % tb == 0, (BH, tb)

    kernel = functools.partial(_mp_attn_kernel,
                               inv_temp=1.0 / float(temperature),
                               num_masks=K)

    out, attn = pl.pallas_call(
        kernel,
        out_shape=(
            jax.ShapeDtypeStruct((K, BH, Lq, D), jnp.float32),
            jax.ShapeDtypeStruct((BH, Lq, Lk), jnp.float32),
        ),
        grid_spec=pltpu.PrefetchScalarGridSpec(
            num_scalar_prefetch=0,
            grid=(BH // tb,),
            in_specs=[
                pl.BlockSpec((tb, Lq, D), lambda b: (b, 0, 0)),    # q
                pl.BlockSpec((tb, Lk, D), lambda b: (b, 0, 0)),    # k
                pl.BlockSpec((tb, Lk, D), lambda b: (b, 0, 0)),    # v
                pl.BlockSpec((K, Lq, Lk), lambda b: (0, 0, 0)),    # mask (resident)
            ],
            out_specs=[
                pl.BlockSpec((K, tb, Lq, D), lambda b: (0, b, 0, 0)),  # per-mask outputs
                pl.BlockSpec((tb, Lq, Lk), lambda b: (b, 0, 0)),       # raw scores
            ],
        ),
        compiler_params=pltpu.CompilerParams(
            dimension_semantics=("parallel",)),
    )(qf, kf, vf, maskf)

    return out.reshape(K, B, H, Lq, D), attn.reshape(B, H, Lq, Lk)


def _reference(q, k, v, mask, temperature):
    attn = jnp.einsum("bhqd,bhkd->bhqk", q / temperature, k,
                      precision=jax.lax.Precision.HIGHEST)
    emask = (1.0 - mask) * (-10000.0)
    outs = []
    for i in range(mask.shape[0]):
        a = attn + emask[i]  # mask[i] is (Lq, Lk), broadcasts over (B, H)
        p = jax.nn.softmax(a, axis=-1)
        outs.append(jnp.einsum("bhqk,bhkd->bhqd", p, v,
                               precision=jax.lax.Precision.HIGHEST))
    return jnp.stack(outs), attn


if __name__ == "__main__":
    B, H, Lq, Lk, D, K = 2, 2, 8, 8, 32, 3
    temperature = float(D) ** 0.5

    key = jax.random.PRNGKey(0)
    kq, kk, kv, km = jax.random.split(key, 4)
    q = jax.random.normal(kq, (B, H, Lq, D), dtype=jnp.float32)
    k = jax.random.normal(kk, (B, H, Lk, D), dtype=jnp.float32)
    v = jax.random.normal(kv, (B, H, Lk, D), dtype=jnp.float32)
    # binary masks (1 = attend, 0 = masked)
    mask = (jax.random.uniform(km, (K, Lq, Lk)) > 0.3).astype(jnp.float32)

    out, attn = mp_scaled_dot_product_attention(q, k, v, mask, temperature)
    out = jax.block_until_ready(out)
    attn = jax.block_until_ready(attn)

    ref_out, ref_attn = _reference(q, k, v, mask, temperature)
    assert out.shape == (K, B, H, Lq, D)
    assert attn.shape == (B, H, Lq, Lk)
    # bf16 MXU operands (f32 accumulation) + approx reciprocal -> relaxed tolerance
    # vs the full-f32 reference.
    assert jnp.allclose(attn, ref_attn, atol=5e-2, rtol=5e-2), \
        float(jnp.max(jnp.abs(attn - ref_attn)))
    assert jnp.allclose(out, ref_out, atol=5e-2, rtol=5e-2), \
        float(jnp.max(jnp.abs(out - ref_out)))

    print("KERNEL_OK")
</pallas_src>

<mosaic_0001>
module attributes {stable_mosaic.version = 11 : i64} {
  func.func @_mp_attn_kernel(%arg0: i32, %arg1: memref<2x8x32xf32, #tpu.memory_space<vmem>>, %arg2: memref<2x8x32xf32, #tpu.memory_space<vmem>>, %arg3: memref<2x8x32xf32, #tpu.memory_space<vmem>>, %arg4: memref<3x8x8xf32, #tpu.memory_space<vmem>>, %arg5: memref<3x2x8x32xf32, #tpu.memory_space<vmem>>, %arg6: memref<2x8x8xf32, #tpu.memory_space<vmem>>) attributes {dimension_semantics = [#tpu.dimension_semantics<parallel>], iteration_bounds = array<i64: 2>, scalar_prefetch = 0 : i64, scratch_operands = 0 : i64, tpu.core_type = #tpu.core_type<tc>, window_params = [{transform_indices = @transform_0, window_bounds = array<i64: 2, 8, 32>}, {transform_indices = @transform_1, window_bounds = array<i64: 2, 8, 32>}, {transform_indices = @transform_2, window_bounds = array<i64: 2, 8, 32>}, {pipeline_mode = #tpu.pipeline_mode<synchronous>, transform_indices = @transform_3, window_bounds = array<i64: 3, 8, 8>}, {transform_indices = @transform_4, window_bounds = array<i64: 3, 2, 8, 32>}, {transform_indices = @transform_5, window_bounds = array<i64: 2, 8, 8>}]} {
    %c0 = arith.constant 0 : index
    %c0_0 = arith.constant 0 : index
    %c0_1 = arith.constant 0 : index
    %0 = vector.load %arg1[%c0, %c0_0, %c0_1] : memref<2x8x32xf32, #tpu.memory_space<vmem>>, vector<2x8x32xf32>
    %c0_2 = arith.constant 0 : index
    %c0_3 = arith.constant 0 : index
    %c0_4 = arith.constant 0 : index
    %1 = vector.load %arg2[%c0_2, %c0_3, %c0_4] : memref<2x8x32xf32, #tpu.memory_space<vmem>>, vector<2x8x32xf32>
    %c0_5 = arith.constant 0 : index
    %c0_6 = arith.constant 0 : index
    %c0_7 = arith.constant 0 : index
    %2 = vector.load %arg3[%c0_5, %c0_6, %c0_7] : memref<2x8x32xf32, #tpu.memory_space<vmem>>, vector<2x8x32xf32>
    %3 = arith.truncf %0 : vector<2x8x32xf32> to vector<2x8x32xbf16>
    %4 = arith.truncf %1 : vector<2x8x32xf32> to vector<2x8x32xbf16>
    %cst = arith.constant dense<0.000000e+00> : vector<2x8x8xf32>
    %5 = tpu.matmul %3, %4, %cst {dimension_numbers = #tpu.dot_dimension_numbers<[2], [2], [1], [1], [0, 0, 0, 1, 1, 1], [0], [0]>} : vector<2x8x32xbf16>, vector<2x8x32xbf16>, vector<2x8x8xf32> -> vector<2x8x8xf32>
    %cst_8 = arith.constant 0.176776692 : f32
    %6 = vector.broadcast %cst_8 : f32 to vector<2x8x8xf32>
    %7 = arith.mulf %5, %6 : vector<2x8x8xf32>
    %c0_9 = arith.constant 0 : index
    %c0_10 = arith.constant 0 : index
    %c0_11 = arith.constant 0 : index
    %8 = vector.load %arg6[%c0_9, %c0_10, %c0_11] : memref<2x8x8xf32, #tpu.memory_space<vmem>>, vector<2x8x8xf32>
    tpu.vector_store %arg6[%c0_9, %c0_10, %c0_11], %7 {strides = array<i32>} : memref<2x8x8xf32, #tpu.memory_space<vmem>>, vector<2x8x8xf32>,
    %cst_12 = arith.constant dense<0xFF800000> : vector<2x8xf32>
    %9 = vector.multi_reduction <maximumf>, %7, %cst_12 [2] : vector<2x8x8xf32> to vector<2x8xf32>
    %10 = vector.shape_cast %9 : vector<2x8xf32> to vector<2x8x1xf32>
    %11 = vector.broadcast %10 : vector<2x8x1xf32> to vector<2x8x8xf32>
    %12 = arith.subf %7, %11 : vector<2x8x8xf32>
    %13 = math.exp %12 : vector<2x8x8xf32>
    %cst_13 = arith.constant dense<0.000000e+00> : vector<2x8xf32>
    %14 = vector.multi_reduction <add>, %13, %cst_13 [2] : vector<2x8x8xf32> to vector<2x8xf32>
    %15 = vector.shape_cast %14 : vector<2x8xf32> to vector<2x8x1xf32>
    %16 = arith.truncf %2 : vector<2x8x32xf32> to vector<2x8x32xbf16>
    %c0_14 = arith.constant 0 : index
    %c0_15 = arith.constant 0 : index
    %c0_16 = arith.constant 0 : index
    %17 = vector.load %arg4[%c0_14, %c0_15, %c0_16] : memref<3x8x8xf32, #tpu.memory_space<vmem>>, vector<1x8x8xf32>
    %18 = vector.shape_cast %17 : vector<1x8x8xf32> to vector<8x8xf32>
    %19 = vector.shape_cast %18 : vector<8x8xf32> to vector<1x8x8xf32>
    %20 = vector.broadcast %19 : vector<1x8x8xf32> to vector<2x8x8xf32>
    %21 = arith.mulf %13, %20 : vector<2x8x8xf32>
    %cst_17 = arith.constant dense<0.000000e+00> : vector<2x8xf32>
    %22 = vector.multi_reduction <add>, %21, %cst_17 [2] : vector<2x8x8xf32> to vector<2x8xf32>
    %23 = vector.shape_cast %22 : vector<2x8xf32> to vector<2x8x1xf32>
    %cst_18 = arith.constant 0.000000e+00 : f32
    %24 = vector.broadcast %cst_18 : f32 to vector<2x8x1xf32>
    %25 = arith.cmpf ogt, %23, %24 : vector<2x8x1xf32>
    %26 = vector.shape_cast %25 : vector<2x8x1xi1> to vector<2x8x1xi1>
    %27 = vector.broadcast %26 : vector<2x8x1xi1> to vector<2x8x8xi1>
    %28 = arith.select %27, %21, %13 : vector<2x8x8xi1>, vector<2x8x8xf32>
    %29 = arith.select %25, %23, %15 : vector<2x8x1xi1>, vector<2x8x1xf32>
    %30 = tpu.reciprocal %29 {approx = true} : vector<2x8x1xf32> -> vector<2x8x1xf32>
    %31 = vector.broadcast %30 : vector<2x8x1xf32> to vector<2x8x8xf32>
    %32 = arith.mulf %28, %31 : vector<2x8x8xf32>
    %33 = arith.truncf %32 : vector<2x8x8xf32> to vector<2x8x8xbf16>
    %cst_19 = arith.constant dense<0.000000e+00> : vector<2x8x32xf32>
    %34 = tpu.matmul %33, %16, %cst_19 {dimension_numbers = #tpu.dot_dimension_numbers<[2], [1], [1], [2], [0, 0, 0, 1, 1, 2], [0], [0]>} : vector<2x8x8xbf16>, vector<2x8x32xbf16>, vector<2x8x32xf32> -> vector<2x8x32xf32>
    %c0_20 = arith.constant 0 : index
    %c0_21 = arith.constant 0 : index
    %c0_22 = arith.constant 0 : index
    %c0_23 = arith.constant 0 : index
    %35 = vector.load %arg5[%c0_20, %c0_21, %c0_22, %c0_23] : memref<3x2x8x32xf32, #tpu.memory_space<vmem>>, vector<1x2x8x32xf32>
    %36 = vector.shape_cast %35 : vector<1x2x8x32xf32> to vector<2x8x32xf32>
    %37 = vector.shape_cast %34 : vector<2x8x32xf32> to vector<1x2x8x32xf32>
    tpu.vector_store %arg5[%c0_20, %c0_21, %c0_22, %c0_23], %37 {strides = array<i32>} : memref<3x2x8x32xf32, #tpu.memory_space<vmem>>, vector<1x2x8x32xf32>,
    %c1 = arith.constant 1 : index
    %c0_24 = arith.constant 0 : index
    %c0_25 = arith.constant 0 : index
    %38 = vector.load %arg4[%c1, %c0_24, %c0_25] : memref<3x8x8xf32, #tpu.memory_space<vmem>>, vector<1x8x8xf32>
    %39 = vector.shape_cast %38 : vector<1x8x8xf32> to vector<8x8xf32>
    %40 = vector.shape_cast %39 : vector<8x8xf32> to vector<1x8x8xf32>
    %41 = vector.broadcast %40 : vector<1x8x8xf32> to vector<2x8x8xf32>
    %42 = arith.mulf %13, %41 : vector<2x8x8xf32>
    %cst_26 = arith.constant dense<0.000000e+00> : vector<2x8xf32>
    %43 = vector.multi_reduction <add>, %42, %cst_26 [2] : vector<2x8x8xf32> to vector<2x8xf32>
    %44 = vector.shape_cast %43 : vector<2x8xf32> to vector<2x8x1xf32>
    %cst_27 = arith.constant 0.000000e+00 : f32
    %45 = vector.broadcast %cst_27 : f32 to vector<2x8x1xf32>
    %46 = arith.cmpf ogt, %44, %45 : vector<2x8x1xf32>
    %47 = vector.shape_cast %46 : vector<2x8x1xi1> to vector<2x8x1xi1>
    %48 = vector.broadcast %47 : vector<2x8x1xi1> to vector<2x8x8xi1>
    %49 = arith.select %48, %42, %13 : vector<2x8x8xi1>, vector<2x8x8xf32>
    %50 = arith.select %46, %44, %15 : vector<2x8x1xi1>, vector<2x8x1xf32>
    %51 = tpu.reciprocal %50 {approx = true} : vector<2x8x1xf32> -> vector<2x8x1xf32>
    %52 = vector.broadcast %51 : vector<2x8x1xf32> to vector<2x8x8xf32>
    %53 = arith.mulf %49, %52 : vector<2x8x8xf32>
    %54 = arith.truncf %53 : vector<2x8x8xf32> to vector<2x8x8xbf16>
    %cst_28 = arith.constant dense<0.000000e+00> : vector<2x8x32xf32>
    %55 = tpu.matmul %54, %16, %cst_28 {dimension_numbers = #tpu.dot_dimension_numbers<[2], [1], [1], [2], [0, 0, 0, 1, 1, 2], [0], [0]>} : vector<2x8x8xbf16>, vector<2x8x32xbf16>, vector<2x8x32xf32> -> vector<2x8x32xf32>
    %c1_29 = arith.constant 1 : index
    %c0_30 = arith.constant 0 : index
    %c0_31 = arith.constant 0 : index
    %c0_32 = arith.constant 0 : index
    %56 = vector.load %arg5[%c1_29, %c0_30, %c0_31, %c0_32] : memref<3x2x8x32xf32, #tpu.memory_space<vmem>>, vector<1x2x8x32xf32>
    %57 = vector.shape_cast %56 : vector<1x2x8x32xf32> to vector<2x8x32xf32>
    %58 = vector.shape_cast %55 : vector<2x8x32xf32> to vector<1x2x8x32xf32>
    tpu.vector_store %arg5[%c1_29, %c0_30, %c0_31, %c0_32], %58 {strides = array<i32>} : memref<3x2x8x32xf32, #tpu.memory_space<vmem>>, vector<1x2x8x32xf32>,
    %c2 = arith.constant 2 : index
    %c0_33 = arith.constant 0 : index
    %c0_34 = arith.constant 0 : index
    %59 = vector.load %arg4[%c2, %c0_33, %c0_34] : memref<3x8x8xf32, #tpu.memory_space<vmem>>, vector<1x8x8xf32>
    %60 = vector.shape_cast %59 : vector<1x8x8xf32> to vector<8x8xf32>
    %61 = vector.shape_cast %60 : vector<8x8xf32> to vector<1x8x8xf32>
    %62 = vector.broadcast %61 : vector<1x8x8xf32> to vector<2x8x8xf32>
    %63 = arith.mulf %13, %62 : vector<2x8x8xf32>
    %cst_35 = arith.constant dense<0.000000e+00> : vector<2x8xf32>
    %64 = vector.multi_reduction <add>, %63, %cst_35 [2] : vector<2x8x8xf32> to vector<2x8xf32>
    %65 = vector.shape_cast %64 : vector<2x8xf32> to vector<2x8x1xf32>
    %cst_36 = arith.constant 0.000000e+00 : f32
    %66 = vector.broadcast %cst_36 : f32 to vector<2x8x1xf32>
    %67 = arith.cmpf ogt, %65, %66 : vector<2x8x1xf32>
    %68 = vector.shape_cast %67 : vector<2x8x1xi1> to vector<2x8x1xi1>
    %69 = vector.broadcast %68 : vector<2x8x1xi1> to vector<2x8x8xi1>
    %70 = arith.select %69, %63, %13 : vector<2x8x8xi1>, vector<2x8x8xf32>
    %71 = arith.select %67, %65, %15 : vector<2x8x1xi1>, vector<2x8x1xf32>
    %72 = tpu.reciprocal %71 {approx = true} : vector<2x8x1xf32> -> vector<2x8x1xf32>
    %73 = vector.broadcast %72 : vector<2x8x1xf32> to vector<2x8x8xf32>
    %74 = arith.mulf %70, %73 : vector<2x8x8xf32>
    %75 = arith.truncf %74 : vector<2x8x8xf32> to vector<2x8x8xbf16>
    %cst_37 = arith.constant dense<0.000000e+00> : vector<2x8x32xf32>
    %76 = tpu.matmul %75, %16, %cst_37 {dimension_numbers = #tpu.dot_dimension_numbers<[2], [1], [1], [2], [0, 0, 0, 1, 1, 2], [0], [0]>} : vector<2x8x8xbf16>, vector<2x8x32xbf16>, vector<2x8x32xf32> -> vector<2x8x32xf32>
    %c2_38 = arith.constant 2 : index
    %c0_39 = arith.constant 0 : index
    %c0_40 = arith.constant 0 : index
    %c0_41 = arith.constant 0 : index
    %77 = vector.load %arg5[%c2_38, %c0_39, %c0_40, %c0_41] : memref<3x2x8x32xf32, #tpu.memory_space<vmem>>, vector<1x2x8x32xf32>
    %78 = vector.shape_cast %77 : vector<1x2x8x32xf32> to vector<2x8x32xf32>
    %79 = vector.shape_cast %76 : vector<2x8x32xf32> to vector<1x2x8x32xf32>
    tpu.vector_store %arg5[%c2_38, %c0_39, %c0_40, %c0_41], %79 {strides = array<i32>} : memref<3x2x8x32xf32, #tpu.memory_space<vmem>>, vector<1x2x8x32xf32>,
    return
  }
  func.func @transform_0(%arg0: i32) -> (i32, i32, i32) {
    %c0_i32 = arith.constant 0 : i32
    %c0_i32_0 = arith.constant 0 : i32
    %c0_i32_1 = arith.constant 0 : i32
    return %arg0, %c0_i32, %c0_i32_0 : i32, i32, i32
  }
  func.func @transform_1(%arg0: i32) -> (i32, i32, i32) {
    %c0_i32 = arith.constant 0 : i32
    %c0_i32_0 = arith.constant 0 : i32
    %c0_i32_1 = arith.constant 0 : i32
    return %arg0, %c0_i32, %c0_i32_0 : i32, i32, i32
  }
  func.func @transform_2(%arg0: i32) -> (i32, i32, i32) {
    %c0_i32 = arith.constant 0 : i32
    %c0_i32_0 = arith.constant 0 : i32
    %c0_i32_1 = arith.constant 0 : i32
    return %arg0, %c0_i32, %c0_i32_0 : i32, i32, i32
  }
  func.func @transform_3(%arg0: i32) -> (i32, i32, i32) {
    %c0_i32 = arith.constant 0 : i32
    %c0_i32_0 = arith.constant 0 : i32
    %c0_i32_1 = arith.constant 0 : i32
    %c0_i32_2 = arith.constant 0 : i32
    return %c0_i32, %c0_i32_0, %c0_i32_1 : i32, i32, i32
  }
  func.func @transform_4(%arg0: i32) -> (i32, i32, i32, i32) {
    %c0_i32 = arith.constant 0 : i32
    %c0_i32_0 = arith.constant 0 : i32
    %c0_i32_1 = arith.constant 0 : i32
    %c0_i32_2 = arith.constant 0 : i32
    return %c0_i32, %arg0, %c0_i32_0, %c0_i32_1 : i32, i32, i32, i32
  }
  func.func @transform_5(%arg0: i32) -> (i32, i32, i32) {
    %c0_i32 = arith.constant 0 : i32
    %c0_i32_0 = arith.constant 0 : i32
    %c0_i32_1 = arith.constant 0 : i32
    return %arg0, %c0_i32, %c0_i32_0 : i32, i32, i32
  }
}

</mosaic_0001>

<bundles_post_ra>
// kernel: tpu_custom_call.1
= control target key start
LH: loop header
LB: loop body
LE: loop exit
PB: predicated region body
PF: predicated region fallthrough
CT: control target
= control target key end

     0   :  { %s1924_s0 = inlined_call_operand.hbm [shape: f32[4,8,32], index: 0, kind: input, shape index: {}]   ;;  %s1925_s1 = inlined_call_operand.hbm [shape: f32[4,8,32], index: 1, kind: input, shape index: {}]   ;;  %s1926_s2 = inlined_call_operand.hbm [shape: f32[4,8,32], index: 2, kind: input, shape index: {}]   ;;  %s1927_s3 = inlined_call_operand.hbm [shape: f32[3,8,8], index: 3, kind: input, shape index: {}]   ;;  %s1928_s4 = inlined_call_operand.hbm [shape: f32[3,4,8,32], index: 4, kind: output, shape index: {0}]   ;;  %s1929_s5 = inlined_call_operand.hbm [shape: f32[4,8,8], index: 5, kind: output, shape index: {1}]  }
   0x1   :  { %1943 = sst [smem:[#allocation23_spill]] %s1925_s1 }
   0x2   :  { %11 = vsyncpa [#allocation3], 0 }
   0x3   :  { %13 = vsyncpa [#allocation3 + $0x1], 0 }
   0x4   :  { %14 = vsyncpa [#allocation6], 0 }
   0x5   :  { %16 = vsyncpa [#allocation6 + $0x1], 0 }
   0x6   :  { %17 = vsyncpa [#allocation9], 0 }
   0x7   :  { %18 = vsyncpa [#allocation4], 0 }
   0x8   :  { %20 = vsyncpa [#allocation4 + $0x1], 0 }
   0x9   :  { %21 = vsyncpa [#allocation12], 0 }
   0xa   :  { %23 = vsyncpa [#allocation12 + $0x1], 0  ;;  %s1497_s18 = smov 0   ;;  %s1499_s19 = smov 0  }
   0xb   :  { %s1501_s20 = smov 0   ;;  %s1503_s21 = smov 0  }
   0xc LB: > { %1944 = sst [smem:[#allocation20_spill]] %s1443_s20  ;;  %s1518_s22 = sadd.s32 1, %s1447_s21   ;;  %s1447_s21 = sphi %s1503_s21, %s1966_s21   ;;  %s1443_s20 = sphi %s1501_s20, %s1968_s20   ;;  %s1439_s19 = sphi %s1499_s19, %s1970_s19   ;;  %s1435_s18 = sphi %s1497_s18, %s1969_s18  }
   0xd   : > { %1945 = sst [smem:[#allocation21_spill]] %s1518_s22  ;;  %s36_s23 = sadd.s32 1, %s1443_s20 }
   0xe   : > { %s33_s24 = ssub.s32 %s1447_s21, %s1518_s22  ;;  %p1930_p0 = scmp.ne.s32.totalorder %s1443_s20, %s1439_s19 }
   0xf   : > { %p34_p1 = scmp.eq.s32.totalorder %s33_s24, 0  ;;  %p44_p2 = scmp.eq.s32.totalorder %s1447_s21, 0 }
  0x10   : > { %p1196_p5 = scmp.lt.s32.totalorder %s1447_s21, 2  ;;  %s211_s26 = sand.u32 1, %s1443_s20  }
  0x11   : > { %s1527_s25 = scalar_select %p34_p1, %s1443_s20, %s36_s23  }
  0x12   : > { %p45_p3 = por %p44_p2, %p1930_p0  ;;  %s1537_s27 = sshll.u32 %s211_s26, 4 }
  0x13   : > { %1946 = sst [smem:[#allocation22_spill]] %s1527_s25  ;;  %s1540_s28 = sshll.u32 %s1447_s21, 8 }
  0x14   : > { %p1542_p6 = pnand %p1196_p5, %p45_p3  ;;  %s232_s30 = sand.u32 1, %s1447_s21  }
  0x15   : > { %s1948_s1 = sld [smem:[#allocation23_spill]]  ;;  %s236_s9 = scalar_lea.vmem [#allocation5], %s1537_s27 }
  0x16   : > { %s243_s10 = sshll.u32 %s236_s9, 4  ;;  %s1556_s11 = scalar_lea.sflag [#allocation6], %s232_s30  ;;  %s1554_s10 = int_to_ptr.vmem [resolvable:$true] %s243_s10 }
  0x17   : > { %p1562_p8 = pneg %p1542_p6 }
  0x1b   : > { %s1551_s8 = scalar_lea.hbm %s1948_s1, %s1540_s28  ;;  %s1266_s16 = scalar_lea.hbm %s1948_s1, 512 }
  0x1c   : > { %s1261_s12 = scalar_lea.hbm %s1551_s8, 256  ;;  %p1267_p11 = scmp.lt.s32.totalorder %s1551_s8, %s1948_s1 }
  0x1d   : > { %p1262_p7 = scmp.ne.s32.totalorder %s1551_s8, %s1261_s12  ;;  %p1268_p12 = scmp.lt.s32.totalorder %s1266_s16, %s1261_s12 }
  0x1f   : > { %p1264_p9 = pnand %p1562_p8, %p1262_p7  ;;  %p1269_p13 = por %p1268_p12, %p1267_p11 }
  0x21   : > { %p1265_p10 = pneg %p1264_p9 }
  0x23   : > { %p1270_p1 = pnand %p1269_p13, %p1265_p10 }
  0x25   : > { %1273 = shalt.err (!%p1270_p1)
}
  0x26   : > { %s1274_s24 = scalar_lea.vmem %s1554_s10, 256  ;;  %s1449_s30 = smov [#allocation5]  }
  0x27   : > { %p1275_p2 = scmp.ne.s32.totalorder %s1554_s10, %s1274_s24  ;;  %s1279_s6 = sshll.u32 %s1449_s30, 4  ;;  %s1280_s6 = int_to_ptr.vmem [resolvable:$false] %s1279_s6 }
  0x28   : > { %s1281_s7 = scalar_lea.vmem %s1280_s6, 512  ;;  %p1282_p7 = scmp.lt.s32.totalorder %s1554_s10, %s1280_s6 }
  0x29   : > { %p1277_p3 = pnand %p1275_p2, %p1562_p8  ;;  %p1283_p9 = scmp.lt.s32.totalorder %s1281_s7, %s1274_s24 }
  0x2b   : > { %p1278_p5 = pneg %p1277_p3  ;;  %p1284_p4 = por %p1283_p9, %p1282_p7 }
  0x2d   : > { %p1285_p0 = pnand %p1284_p4, %p1278_p5 }
  0x2f   : > { %1288 = shalt.err (!%p1285_p0)
}
  0x30   : > { %s1931_s9 = smov 128   ;;  %s1933_s12 = smov 8  }
  0x31   : > { %1184 = dma.hbm_to_vmem [thread:$0]  (!%p1542_p6), %s1551_s8, 256, %s1554_s10, %s1556_s11, %s1931_s9, %s1931_s9, %s1933_s12  }
  0x32   : > { %s1589_s14 = sadd.s32 4294967295, %s1447_s21   ;;  %s1046_s15 = sadd.s32 4294967294, %s1447_s21  }
  0x33   : > { %p49_p0 = scmp.ne.s32.totalorder %s1439_s19, %s1435_s18  ;;  %p1937_p4 = scmp.eq.s32.totalorder %s1589_s14, 0 }
  0x34   : > { %p146_p10 = scmp.eq.s32.totalorder %s1589_s14, 1  ;;  %p152_p11 = scmp.eq.s32.totalorder %s1046_s15, 1 }
  0x35   : > { %p1598_p12 = por %p1937_p4, %p49_p0  ;;  %p1047_p13 = scmp.ge.s32.totalorder %s1447_s21, 1 }
  0x36   : > { %p1951_p1 = scmp.ne.s32.totalorder %s1443_s20, %s1439_s19  ;;  %p1610_p3 = por %p152_p11, %p49_p0 }
  0x37   : > { %s1950_s16 = scalar_select %p1598_p12, 1, 0 }
  0x38   : > { %p1606_p2 = por %p146_p10, %p1951_p1  ;;  %p185_p5 = scmp.lt.s32.totalorder %s1447_s21, 3 }
  0x39   : > { %s1953_s10 = scalar_select %p1610_p3, 1, 0 }
  0x3a   : > { %s1952_s8 = scalar_select %p1606_p2, 1, 0 }
  0x3b   : > { %p1615_p7 = pnand %p1047_p13, %p185_p5  ;;  %s1452_s23 = smov [#allocation8]  }
  0x3c   : > { %s197_s24 = sshll.u32 %s1452_s23, 4  ;;  %s1627_s7 = scalar_lea.hbm %s1924_s0, %s1540_s28  ;;  %s1619_s24 = int_to_ptr.vmem [resolvable:$true] %s197_s24 }
  0x3d   : > { %s1954_s17 = scalar_select %p1615_p7, 1, 0 }
  0x3e   : > { %p1174_p9 = pneg %p1615_p7  ;;  %s215_s15 = scalar_lea.vmem [#allocation2], %s1537_s27 }
  0x3f   : > { %s222_s9 = sshll.u32 %s215_s15, 4  ;;  %s212_s23 = scalar_lea.sflag [#allocation3], %s211_s26  ;;  %s1636_s9 = int_to_ptr.vmem [resolvable:$true] %s222_s9 }
  0x40   : > { %p1632_p0 = pnand %p1174_p9, %p1937_p4  ;;  %s1289_s1 = scalar_lea.hbm %s1627_s7, 256 }
  0x41   : > { %p1290_p10 = scmp.ne.s32.totalorder %s1627_s7, %s1289_s1  ;;  %s1294_s25 = scalar_lea.hbm %s1924_s0, 512 }
  0x42   : > { %s1955_s12 = scalar_select %p1632_p0, 1, 0 }
  0x43   : > { %p1292_p11 = pnand %p1290_p10, %p1562_p8  ;;  %p1295_p1 = scmp.lt.s32.totalorder %s1627_s7, %s1924_s0 }
  0x44   : > { %p1296_p5 = scmp.lt.s32.totalorder %s1294_s25, %s1289_s1 }
  0x45   : > { %p1293_p13 = pneg %p1292_p11 }
  0x46   : > { %p1297_p9 = por %p1296_p5, %p1295_p1 }
  0x48   : > { %p1298_p4 = pnand %p1297_p9, %p1293_p13 }
  0x4a   : > { %1301 = shalt.err (!%p1298_p4)
}
  0x4b   : > { %s1302_s26 = scalar_lea.vmem %s1636_s9, 256  ;;  %s1453_s20 = smov [#allocation2]  }
  0x4c   : > { %p1303_p3 = scmp.ne.s32.totalorder %s1636_s9, %s1302_s26  ;;  %s1307_s30 = sshll.u32 %s1453_s20, 4  ;;  %s1308_s30 = int_to_ptr.vmem [resolvable:$false] %s1307_s30 }
  0x4d   : > { %s1309_s6 = scalar_lea.vmem %s1308_s30, 512  ;;  %p1310_p2 = scmp.lt.s32.totalorder %s1636_s9, %s1308_s30 }
  0x4e   : > { %p1305_p10 = pnand %p1303_p3, %p1562_p8  ;;  %p1311_p12 = scmp.lt.s32.totalorder %s1309_s6, %s1302_s26 }
  0x50   : > { %p1306_p11 = pneg %p1305_p10  ;;  %p1312_p7 = por %p1311_p12, %p1310_p2 }
  0x52   : > { %p1313_p0 = pnand %p1312_p7, %p1306_p11 }
  0x54   : > { %1316 = shalt.err (!%p1313_p0)
}
  0x55   : > { %s1956_s1 = smov 8   ;;  %s1957_s22 = smov 128  }
  0x56   : > { %1181 = dma.hbm_to_vmem [thread:$0]  (!%p1542_p6), %s1627_s7, 256, %s1636_s9, %s212_s23, %s1957_s22, %s1957_s22, %s1956_s1  }
  0x57   : > { %s1667_s15 = scalar_lea.hbm %s1926_s2, %s1540_s28  ;;  %p1958_p4 = scmp.ne.s32.totalorder %s1955_s12, 0 }
  0x58   : > { %s1328_s26 = scalar_lea.vmem %s1619_s24, 384  ;;  %p1336_p0 = scmp.lt.s32.totalorder %s1619_s24, %s1619_s24 }
  0x59   : > { %p1319_p12 = pneg %p1958_p4  ;;  %p1329_p2 = scmp.ne.s32.totalorder %s1619_s24, %s1328_s26 }
  0x5a   : > { %p1337_p13 = scmp.lt.s32.totalorder %s1328_s26, %s1328_s26 }
  0x5b   : > { %p1331_p3 = pnand %p1329_p2, %p1319_p12 }
  0x5c   : > { %p1338_p1 = por %p1337_p13, %p1336_p0 }
  0x5d   : > { %p1332_p7 = pneg %p1331_p3 }
  0x5f   : > { %p1339_p5 = pnand %p1338_p1, %p1332_p7 }
  0x61   : > { %1342 = shalt.err (!%p1339_p5)
}
  0x62   : > { %1177 = dma.hbm_to_vmem [thread:$0]  (!%p1958_p4), %s1927_s3, 384, %s1619_s24, [#allocation9], %s1957_s22, %s1957_s22, %s1956_s1  }
  0x63   : > { %s257_s7 = scalar_lea.vmem [#allocation7], %s1537_s27  ;;  %s1343_s30 = scalar_lea.hbm %s1667_s15, 256 }
  0x64   : > { %s264_s23 = sshll.u32 %s257_s7, 4  ;;  %p1344_p9 = scmp.ne.s32.totalorder %s1667_s15, %s1343_s30  ;;  %s265_s23 = int_to_ptr.vmem [resolvable:$true] %s264_s23 }
  0x65   : > { %s1348_s20 = scalar_lea.hbm %s1926_s2, 512  ;;  %p1349_p12 = scmp.lt.s32.totalorder %s1667_s15, %s1926_s2 }
  0x66   : > { %p1346_p10 = pnand %p1344_p9, %p1562_p8  ;;  %p1350_p2 = scmp.lt.s32.totalorder %s1348_s20, %s1343_s30 }
  0x68   : > { %p1347_p11 = pneg %p1346_p10  ;;  %p1351_p3 = por %p1350_p2, %p1349_p12 }
  0x6a   : > { %p1352_p7 = pnand %p1351_p3, %p1347_p11 }
  0x6c   : > { %1355 = shalt.err (!%p1352_p7)
}
  0x6d   : > { %s1356_s27 = scalar_lea.vmem %s265_s23, 256  ;;  %s1454_s24 = smov [#allocation7]  }
  0x6e   : > { %p1357_p4 = scmp.ne.s32.totalorder %s265_s23, %s1356_s27  ;;  %s1361_s28 = sshll.u32 %s1454_s24, 4  ;;  %s1362_s28 = int_to_ptr.vmem [resolvable:$false] %s1361_s28 }
  0x6f   : > { %s1363_s9 = scalar_lea.vmem %s1362_s28, 512  ;;  %p1364_p1 = scmp.lt.s32.totalorder %s265_s23, %s1362_s28 }
  0x70   : > { %p1359_p0 = pnand %p1357_p4, %p1562_p8  ;;  %p1365_p5 = scmp.lt.s32.totalorder %s1363_s9, %s1356_s27 }
  0x72   : > { %p1360_p13 = pneg %p1359_p0  ;;  %p1366_p9 = por %p1365_p5, %p1364_p1 }
  0x74   : > { %p1367_p10 = pnand %p1366_p9, %p1360_p13 }
  0x76   : > { %1370 = shalt.err (!%p1367_p10)
}
  0x77   : > { %1187 = dma.hbm_to_vmem [thread:$0]  (!%p1542_p6), %s1667_s15, 256, %s265_s23, %s1556_s11, %s1957_s22, %s1957_s22, %s1956_s1  }
  0x78   : > { %p1959_p8 = scmp.ne.s32.totalorder %s1954_s17, 0 }
  0x79   : > { %s1708_s13 = sand.u32 (!%p1959_p8), 1, %s1439_s19   ;;  %p1960_p11 = scmp.ne.s32.totalorder (!%p1959_p8), %s1950_s16, 0 }
  0x7a   : > { %276 = sbr.rel (%p1959_p8) target bundleno = 913 (0x391), region = 36  ;;  %s1711_s7 = sshll.u32 (!%p1959_p8), %s1708_s13, 4 }
  0x7b   : > { %s279_s30 = scalar_lea.sflag (!%p1959_p8), [#allocation3], %s1708_s13  ;;  %s282_s29 = scalar_lea.vmem (!%p1959_p8), [#allocation2], %s1711_s7 }
  0x7f   : > { %1414 = dma.done.wait (%p1960_p11), %s279_s30, 256  }
  0x80   : > { %1416 = vsyncadd (%p1960_p11), %s279_s30, 4294967040  ;;  %s287_s11 = sand.u32 1, %s1589_s14   ;;  %s291_s1 = scalar_lea.vmem [#allocation5], %s1711_s7 }
  0x81   : > { %s288_s17 = scalar_lea.sflag [#allocation6], %s287_s11 }
  0x82   : > { %1418 = dma.done.wait (%p1960_p11), %s288_s17, 512  }
  0x83   : > { %1420 = vsyncadd (%p1960_p11), %s288_s17, 4294966784  ;;  %s300_s22 = scalar_lea.vmem [#allocation7], %s1711_s7  ;;  %p1961_p6 = scmp.eq.s32.totalorder %s1589_s14, 0 }
  0x85   : > { %1422 = dma.done.wait (%p1961_p6), [#allocation9], 384   ;;  %p1962_p12 = pmov %p1961_p6 }
  0x86   : > { %v1455_v0 = vmov 0.0   ;;  %vm1456_vm0 = vmmov 0   ;;  %v354_v1 = vld [vmem:[%s291_s1] sm:$0xff]  ;;  %vm362_vm1 = vcmask 261120   ;;  %v355_v2 = vld [vmem:[%s291_s1 + $0x8] sm:$0xff]  ;;  %vm457_vm2 = vcmask 64512  }
  0x87   : > { %1424 = vsyncadd (%p1962_p12), [#allocation9], 4294966912  ;;  %1105 = vmatprep.subr.bf16.mxu0 %v1455_v0  ;;  %1111 = vmatprep.subr.bf16.mxu1 %v1455_v0  ;;  %v360_v3 = vpack.c.bf16 %v354_v1, %v354_v1  ;;  %v361_v4 = vpack.c.bf16 %v355_v2, %v355_v2  ;;  %v352_v7 = vld [vmem:[%s282_s29] sm:$0xff]  ;;  %v353_v8 = vld [vmem:[%s282_s29 + $0x8] sm:$0xff]  ;;  %s1747_s16 = scalar_lea.vmem [#allocation11], %s1711_s7  ;;  %vm508_vm3 = vcmask 1043456  }
  0x88   : > { %1107 = vmatprep.mubr.msk.bf16.mxu0 %vm1456_vm0, %v1455_v0  ;;  %1113 = vmatprep.mubr.msk.bf16.mxu1 %vm1456_vm0, %v1455_v0  ;;  %v358_v9 = vpack.c.bf16 %v352_v7, %v352_v7  ;;  %v359_v10 = vpack.c.bf16 %v353_v8, %v353_v8  ;;  %v480_v29 = vld [vmem:[#allocation8] sm:$0xff]  ;;  %v601_v30 = vld [vmem:[#allocation8 + $0x8] sm:$0xff]  ;;  %v716_v35 = vld [vmem:[#allocation8 + $0x10] sm:$0xff]  ;;  %s1153_s15 = smul.u32 48, %s1708_s13  ;;  %s831_s12 = scalar_lea.sflag [#allocation4], %s1708_s13 }
  0x89   : > { %v367_v5 = vsel %vm362_vm1, %v360_v3, 0  ;;  %v413_v6 = vsel %vm362_vm1, %v361_v4, 0  ;;  %v356_v48 = vld [vmem:[%s300_s22] sm:$0xff]  ;;  %v357_v51 = vld [vmem:[%s300_s22 + $0x8] sm:$0xff]  ;;  %s836_s6 = scalar_lea.sflag [#allocation12], %s1708_s13 }
  0x8a   : > { %1106 = vmatpush3.bf16.xpose.msra.mxu0 %v367_v5  ;;  %1112 = vmatpush3.bf16.xpose.msra.mxu1 %v413_v6  ;;  %v478_v49 = vpack.c.bf16 %v356_v48, %v356_v48  ;;  %v479_v52 = vpack.c.bf16 %v357_v51, %v357_v51  ;;  %s1841_s23 = scalar_lea.vmem [#allocation10], %s1153_s15 }
  0x8b   : > { %1117 = vmatprep.subr.bf16.mxu0 %v1455_v0  ;;  %1123 = vmatprep.subr.bf16.mxu1 %v1455_v0 }
  0x8c   : > { %v510_v50 = vsel %vm508_vm3, %v478_v49, 0  ;;  %v1795_v53 = vsel %vm508_vm3, %v479_v52, 0 }
  0x91   : > { %1108 = vmatmul.mubr.msk.bf16.vlgmr.msra.gmra.mxu0 %vm362_vm1, %v358_v9  ;;  %1114 = vmatmul.mubr.msk.bf16.vlgmr.msra.gmra.mxu1 %vm362_vm1, %v359_v10 }
  0x92   : > { %1119 = vmatprep.mubr.msk.bf16.mxu0 %vm1456_vm0, %v1455_v0  ;;  %1125 = vmatprep.mubr.msk.bf16.mxu1 %vm1456_vm0, %v1455_v0 }
  0x93   : > { %1118 = vmatpush3.bf16.msra.mxu0 %v510_v50  ;;  %1124 = vmatpush3.bf16.msra.mxu1 %v1795_v53 }
  0x94   : > { %1129 = vmatprep.subr.bf16.mxu0 %v1455_v0  ;;  %1135 = vmatprep.subr.bf16.mxu1 %v1455_v0 }
 0x151   : > { %v403_v11 = vpop.f32.mrf.mxu0  ;;  %v449_v12 = vpop.f32.mrf.mxu1 }
 0x152   : > { %v455_v13 = vmul.f32 0.17677669, %v403_v11  ;;  %v456_v14 = vmul.f32 0.17677669, %v449_v12 }
 0x153   : > { %v1109_v15 = vpop.f32.mrf.mxu0  ;;  %v1115_v16 = vpop.f32.mrf.mxu1 }
 0x154   : > { %458 = vst.msk [vmem:[%s1747_s16] sm:$0xff] %vm457_vm2, %v455_v13  ;;  %459 = vst.msk [vmem:[%s1747_s16 + $0x8] sm:$0xff] %vm457_vm2, %v456_v14  ;;  %v460_v17 = vsel %vm457_vm2, %v455_v13, -inf  ;;  %v463_v20 = vsel %vm457_vm2, %v456_v14, -inf }
 0x155   : > { %v452_v18 = vpop.f32.mrf.mxu1  ;;  %461 = vmax.xlane.f32.xlu0 %v460_v17  ;;  %v406_v19 = vpop.f32.mrf.mxu0 }
 0x157   : > { %v1110_v21 = vpop.f32.mrf.mxu0  ;;  %v1116_v22 = vpop.f32.mrf.mxu1 }
 0x159   : > { %464 = vmax.xlane.f32.xlu0 %v463_v20 }
 0x1de   : > { %v462_v23 = vpop.xlane.xlu0 %461 }
 0x1df   : > { %v466_v24 = vsub.f32 %v455_v13, %v462_v23 }
 0x1e1   : > { %v468_v25 = vmul.f32 1.442695, %v466_v24 }
 0x1e2   : > { %v465_v26 = vpop.xlane.xlu0 %464 }
 0x1e3   : > { %1245 = vpow2.f32 %v468_v25  ;;  %v467_v27 = vsub.f32 %v456_v14, %v465_v26 }
 0x1e5   : > { %v470_v28 = vmul.f32 1.442695, %v467_v27 }
 0x1e7   : > { %1247 = vpow2.f32 %v470_v28 }
 0x1f0   : > { %v1755_v31 = vpop.eup %1245 }
 0x1f1   : > { %v472_v32 = vsel %vm457_vm2, %v1755_v31, 0.0  ;;  %v481_v33 = vmul.f32 %v1755_v31, %v480_v29  ;;  %v1761_v34 = vmul.f32 %v1755_v31, %v601_v30  ;;  %v1772_v40 = vmul.f32 %v1755_v31, %v716_v35 }
 0x1f2   : > { %473 = vadd.xlane.f32.xlu0 %v472_v32 }
 0x1f3   : > { %v483_v36 = vsel %vm457_vm2, %v481_v33, 0.0  ;;  %v604_v38 = vsel %vm457_vm2, %v1761_v34, 0.0  ;;  %v719_v42 = vsel %vm457_vm2, %v1772_v40, 0.0 }
 0x1f4   : > { %v1764_v37 = vpop.eup %1247  ;;  %484 = vadd.xlane.f32.xlu1 %v483_v36 }
 0x1f5   : > { %v1769_v39 = vmul.f32 %v1764_v37, %v480_v29  ;;  %v475_v43 = vsel %vm457_vm2, %v1764_v37, 0.0  ;;  %v1781_v44 = vmul.f32 %v1764_v37, %v601_v30  ;;  %v1786_v46 = vmul.f32 %v1764_v37, %v716_v35 }
 0x1f6   : > { %605 = vadd.xlane.f32.xlu0 %v604_v38 }
 0x1f7   : > { %v486_v41 = vsel %vm457_vm2, %v1769_v39, 0.0  ;;  %v607_v45 = vsel %vm457_vm2, %v1781_v44, 0.0  ;;  %v722_v47 = vsel %vm457_vm2, %v1786_v46, 0.0 }
 0x1f8   : > { %487 = vadd.xlane.f32.xlu1 %v486_v41 }
 0x1fa   : > { %720 = vadd.xlane.f32.xlu0 %v719_v42 }
 0x1fc   : > { %476 = vadd.xlane.f32.xlu1 %v475_v43 }
 0x200   : > { %608 = vadd.xlane.f32.xlu1 %v607_v45 }
 0x204   : > { %723 = vadd.xlane.f32.xlu1 %v722_v47 }
 0x27b   : > { %v474_v54 = vpop.xlane.xlu0 %473 }
 0x27d   : > { %v485_v55 = vpop.xlane.xlu1 %484 }
 0x27e   : > { %vm489_vm4 = vcmp.gt.f32.partialorder %v485_v55, 0.0 }
 0x27f   : > { %v497_v56 = vsel %vm489_vm4, %v485_v55, %v474_v54  ;;  %v606_v57 = vpop.xlane.xlu0 %605  ;;  %v495_v4 = vsel %vm489_vm4, %v481_v33, %v1755_v31 }
 0x280   : > { %1249 = vrcp.f32 %v497_v56  ;;  %vm610_vm5 = vcmp.gt.f32.partialorder %v606_v57, 0.0 }
 0x281   : > { %v618_v58 = vsel %vm610_vm5, %v606_v57, %v474_v54  ;;  %v488_v59 = vpop.xlane.xlu1 %487  ;;  %v616_v10 = vsel %vm610_vm5, %v1761_v34, %v1755_v31 }
 0x282   : > { %1251 = vrcp.f32 %v618_v58  ;;  %vm490_vm6 = vcmp.gt.f32.partialorder %v488_v59, 0.0 }
 0x283   : > { %v721_v60 = vpop.xlane.xlu0 %720  ;;  %v496_v13 = vsel %vm490_vm6, %v1769_v39, %v1764_v37 }
 0x284   : > { %vm725_vm7 = vcmp.gt.f32.partialorder %v721_v60, 0.0 }
 0x285   : > { %v477_v61 = vpop.xlane.xlu1 %476  ;;  %v733_v63 = vsel %vm725_vm7, %v721_v60, %v474_v54  ;;  %v731_v20 = vsel %vm725_vm7, %v1772_v40, %v1755_v31 }
 0x286   : > { %v498_v62 = vsel %vm490_vm6, %v488_v59, %v477_v61 }
 0x287   : > { %1253 = vrcp.f32 %v498_v62 }
 0x288   : > { %1255 = vrcp.f32 %v733_v63 }
 0x289   : > { %v609_v1 = vpop.xlane.xlu1 %608 }
 0x28a   : > { %vm611_vm8 = vcmp.gt.f32.partialorder %v609_v1, 0.0 }
 0x28b   : > { %v619_v2 = vsel %vm611_vm8, %v609_v1, %v477_v61  ;;  %v617_v19 = vsel %vm611_vm8, %v1781_v44, %v1764_v37 }
 0x28c   : > { %1257 = vrcp.f32 %v619_v2 }
 0x28d   : > { %v1250_v3 = vpop.eup %1249  ;;  %v724_v5 = vpop.xlane.xlu1 %723 }
 0x28e   : > { %v501_v6 = vmul.f32 %v1250_v3, %v495_v4  ;;  %vm726_vm9 = vcmp.gt.f32.partialorder %v724_v5, 0.0 }
 0x28f   : > { %v734_v8 = vsel %vm726_vm9, %v724_v5, %v477_v61  ;;  %v1252_v9 = vpop.eup %1251  ;;  %v732_v26 = vsel %vm726_vm9, %v1786_v46, %v1764_v37 }
 0x290   : > { %v503_v7 = vpack.c.bf16 %v501_v6, %v501_v6  ;;  %1259 = vrcp.f32 %v734_v8  ;;  %v622_v12 = vmul.f32 %v1252_v9, %v616_v10 }
 0x292   : > { %1120 = vmatmul.mubr.msk.bf16.vlgmr.msra.gmra.mxu0 %vm457_vm2, %v503_v7  ;;  %v624_v17 = vpack.c.bf16 %v622_v12, %v622_v12 }
 0x293   : > { %1130 = vmatpush3.bf16.msra.mxu0 %v510_v50  ;;  %1131 = vmatprep.mubr.msk.bf16.mxu0 %vm1456_vm0, %v1455_v0 }
 0x294   : > { %v1254_v11 = vpop.eup %1253  ;;  %1141 = vmatprep.subr.bf16.mxu0 %v1455_v0 }
 0x295   : > { %v502_v14 = vmul.f32 %v1254_v11, %v496_v13  ;;  %v1256_v16 = vpop.eup %1255 }
 0x296   : > { %v737_v22 = vmul.f32 %v1256_v16, %v731_v20 }
 0x297   : > { %v504_v15 = vpack.c.bf16 %v502_v14, %v502_v14 }
 0x298   : > { %v739_v25 = vpack.c.bf16 %v737_v22, %v737_v22 }
 0x299   : > { %v1258_v18 = vpop.eup %1257  ;;  %1126 = vmatmul.mubr.msk.bf16.vlgmr.msra.gmra.mxu1 %vm457_vm2, %v504_v15 }
 0x29a   : > { %1136 = vmatpush3.bf16.msra.mxu1 %v1795_v53  ;;  %1132 = vmatmul.mubr.msk.bf16.vlgmr.msra.gmra.mxu0 %vm457_vm2, %v624_v17  ;;  %v623_v21 = vmul.f32 %v1258_v18, %v617_v19 }
 0x29b   : > { %1142 = vmatpush3.bf16.msra.mxu0 %v510_v50  ;;  %1137 = vmatprep.mubr.msk.bf16.mxu1 %vm1456_vm0, %v1455_v0 }
 0x29c   : > { %1147 = vmatprep.subr.bf16.mxu1 %v1455_v0  ;;  %1143 = vmatprep.mubr.msk.bf16.mxu0 %vm1456_vm0, %v1455_v0  ;;  %v625_v23 = vpack.c.bf16 %v623_v21, %v623_v21 }
 0x29d   : > { %v1260_v24 = vpop.eup %1259 }
 0x29e   : > { %v738_v27 = vmul.f32 %v1260_v24, %v732_v26 }
 0x2a0   : > { %v740_v28 = vpack.c.bf16 %v738_v27, %v738_v27 }
 0x2a1   : > { %1138 = vmatmul.mubr.msk.bf16.vlgmr.msra.gmra.mxu1 %vm457_vm2, %v625_v23 }
 0x2a2   : > { %1148 = vmatpush3.bf16.msra.mxu1 %v1795_v53  ;;  %1144 = vmatmul.mubr.msk.bf16.vlgmr.msra.gmra.mxu0 %vm457_vm2, %v739_v25 }
 0x2a3   : > { %1149 = vmatprep.mubr.msk.bf16.mxu1 %vm1456_vm0, %v1455_v0 }
 0x2a9   : > { %1150 = vmatmul.mubr.msk.bf16.vlgmr.msra.gmra.mxu1 %vm457_vm2, %v740_v28 }
 0x352   : > { %v546_v29 = vpop.f32.mrf.mxu0 }
 0x353   : > { %598 = vst.msk [vmem:[%s1841_s23] sm:$0xff] %vm362_vm1, %v546_v29 }
 0x354   : > { %v1121_v30 = vpop.f32.mrf.mxu0 }
 0x356   : > { %v549_v31 = vpop.f32.mrf.mxu0 }
 0x358   : > { %v1122_v32 = vpop.f32.mrf.mxu0 }
 0x359   : > { %v592_v33 = vpop.f32.mrf.mxu1 }
 0x35a   : > { %599 = vst.msk [vmem:[%s1841_s23 + $0x8] sm:$0xff] %vm362_vm1, %v592_v33  ;;  %v663_v0 = vpop.f32.mrf.mxu0 }
 0x35b   : > { %1071 = vst.msk [vmem:[%s1841_s23 + $0x10] sm:$0xff] %vm362_vm1, %v663_v0  ;;  %v1127_v34 = vpop.f32.mrf.mxu1 }
 0x35c   : > { %v1133_v35 = vpop.f32.mrf.mxu0 }
 0x35d   : > { %v595_v36 = vpop.f32.mrf.mxu1 }
 0x35e   : > { %v666_v37 = vpop.f32.mrf.mxu0 }
 0x35f   : > { %v1128_v38 = vpop.f32.mrf.mxu1 }
 0x360   : > { %v1134_v39 = vpop.f32.mrf.mxu0 }
 0x361   : > { %v706_v40 = vpop.f32.mrf.mxu1 }
 0x362   : > { %1072 = vst.msk [vmem:[%s1841_s23 + $0x18] sm:$0xff] %vm362_vm1, %v706_v40  ;;  %v778_v41 = vpop.f32.mrf.mxu0 }
 0x363   : > { %1075 = vst.msk [vmem:[%s1841_s23 + $0x20] sm:$0xff] %vm362_vm1, %v778_v41  ;;  %v1139_v42 = vpop.f32.mrf.mxu1 }
 0x364   : > { %v1145_v43 = vpop.f32.mrf.mxu0 }
 0x365   : > { %v709_v44 = vpop.f32.mrf.mxu1 }
 0x366   : > { %v781_v45 = vpop.f32.mrf.mxu0 }
 0x367   : > { %v1140_v46 = vpop.f32.mrf.mxu1 }
 0x368   : > { %v1146_v47 = vpop.f32.mrf.mxu0 }
 0x369   : > { %v821_v48 = vpop.f32.mrf.mxu1 }
 0x36a   : > { %1076 = vst.msk [vmem:[%s1841_s23 + $0x28] sm:$0xff] %vm362_vm1, %v821_v48 }
 0x36b   : > { %v1151_v49 = vpop.f32.mrf.mxu1 }
 0x36d   : > { %v824_v50 = vpop.f32.mrf.mxu1 }
 0x36f   : > { %v1152_v51 = vpop.f32.mrf.mxu1 }
 0x370   : > { %s1087_s20 = sshll.u32 %s1589_s14, 8  ;;  %s859_s25 = sshll.u32 %s1841_s23, 4  ;;  %s860_s25 = int_to_ptr.vmem [resolvable:$true] %s859_s25 }
 0x371   : > { %s848_s24 = scalar_lea.hbm %s1928_s4, %s1087_s20  ;;  %s1457_s28 = smov 256  }
 0x372   : > { %p1963_p2 = scmp.ne.s32.totalorder %s1952_s8, 0  ;;  %s1458_s9 = smov 512  }
 0x373   : > { %s1459_s7 = smov 2   ;;  %s1460_s30 = smov 128  }
 0x374   : > { %1164 = sst [smem:[#allocation14]] (%p1963_p2), %s1457_s28  ;;  %s1461_s14 = smov 8  }
 0x375   : > { %1165 = sst [smem:[#allocation14 + $0x1]] (%p1963_p2), %s1458_s9  ;;  %s1462_s29 = smov 131072  }
 0x376   : > { %1166 = sst [smem:[#allocation14 + $0x2]] (%p1963_p2), %s1459_s7  ;;  %s1463_s11 = smov 0  }
 0x377   : > { %1167 = sst [smem:[#allocation14 + $0x3]] (%p1963_p2), %s1460_s30  ;;  %s1879_s22 = scalar_lea.hbm %s1929_s5, %s1087_s20 }
 0x378   : > { %1168 = sst [smem:[#allocation14 + $0x4]] (%p1963_p2), %s1460_s30  ;;  %s888_s15 = sshll.u32 %s1747_s16, 4  ;;  %s1882_s15 = int_to_ptr.vmem [resolvable:$true] %s888_s15 }
 0x379   : > { %1169 = sst [smem:[#allocation14 + $0x5]] (%p1963_p2), %s1461_s14  ;;  %s1371_s23 = scalar_lea.vmem %s1882_s15, 256 }
 0x37a   : > { %1170 = dma.general (%p1963_p2), %s860_s25, 768, %s848_s24, %s831_s12, %s1462_s29, [#allocation14], %s1463_s11, 0  }
 0x37b   : > { %p1372_p3 = scmp.ne.s32.totalorder %s1882_s15, %s1371_s23  ;;  %s1464_s26 = smov [#allocation11]  }
 0x37c   : > { %s1375_s12 = sshll.u32 %s1464_s26, 4  ;;  %s1376_s12 = int_to_ptr.vmem [resolvable:$false] %s1375_s12 }
 0x37d   : > { %p1373_p7 = pnand %p1372_p3, %p1963_p2  ;;  %s1377_s25 = scalar_lea.vmem %s1376_s12, 512 }
 0x37e   : > { %p1378_p0 = scmp.lt.s32.totalorder %s1882_s15, %s1376_s12  ;;  %p1379_p13 = scmp.lt.s32.totalorder %s1377_s25, %s1371_s23 }
 0x37f   : > { %p1374_p4 = pneg %p1373_p7 }
 0x380   : > { %p1380_p1 = por %p1379_p13, %p1378_p0 }
 0x382   : > { %p1381_p5 = pnand %p1380_p1, %p1374_p4 }
 0x384   : > { %1384 = shalt.err (!%p1381_p5)
}
 0x385   : > { %s1385_s16 = scalar_lea.hbm %s1879_s22, 256  ;;  %s1389_s24 = scalar_lea.hbm %s1929_s5, 512 }
 0x386   : > { %p1386_p9 = scmp.ne.s32.totalorder %s1879_s22, %s1385_s16  ;;  %p1390_p11 = scmp.lt.s32.totalorder %s1879_s22, %s1929_s5 }
 0x387   : > { %p1391_p6 = scmp.lt.s32.totalorder %s1389_s24, %s1385_s16 }
 0x388   : > { %p1387_p10 = pnand %p1386_p9, %p1963_p2 }
 0x389   : > { %p1392_p12 = por %p1391_p6, %p1390_p11 }
 0x38a   : > { %p1388_p8 = pneg %p1387_p10 }
 0x38c   : > { %p1393_p3 = pnand %p1392_p12, %p1388_p8 }
 0x38e   : > { %1396 = shalt.err (!%p1393_p3)
}
 0x38f   : > { %s1465_s7 = smov 128   ;;  %s1466_s30 = smov 8  }
 0x390   : > { %1171 = dma.vmem_to_hbm [thread:$0]  (%p1963_p2), %s1882_s15, 256, %s1879_s22, %s836_s6, %s1465_s7, %s1465_s7, %s1466_s30  }
 0x391 PF: > { %s903_s14 = sand.u32 1, %s1435_s18   ;;  %p1964_p7 = scmp.ne.s32.totalorder %s1953_s10, 0 }
 0x392   : > { %p1965_p4 = scmp.ge.s32.totalorder %s1447_s21, 2  ;;  %s904_s29 = scalar_lea.sflag [#allocation4], %s903_s14 }
 0x394   : > { %p1189_p0 = pnand %p1965_p4, %p1964_p7 }
 0x396   : > { %p1190_p13 = pneg %p1189_p0 }
 0x398   : > { %1426 = dma.done.wait (%p1190_p13), %s904_s29, 768  }
 0x399   : > { %1428 = vsyncadd (%p1190_p13), %s904_s29, 4294966528  ;;  %s913_s11 = scalar_lea.sflag [#allocation12], %s903_s14 }
 0x39a   : > { %1430 = dma.done.wait (%p1190_p13), %s913_s11, 256  }
 0x39b   : > { %1432 = vsyncadd (%p1190_p13), %s913_s11, 4294967040  ;;  %s1966_s21 = sld [smem:[#allocation21_spill]]  ;;  %s1969_s18 = smov %s1439_s19 }
 0x39c   : > { %s1967_s8 = sld [smem:[#allocation20_spill]] }
 0x39d   : > { %s1968_s20 = sld [smem:[#allocation22_spill]] }
 0x3a1   : > { %p26_p2 = scmp.ge.s32.totalorder %s1966_s21, 4  }
 0x3a2   : > { %s1970_s19 = smov %s1967_s8 }
 0x3a3   :  { %28 = sbr.rel (!%p26_p2) target bundleno = 12 (0xc), region = 135 }
 0x3a8   :  { %918 = vsyncpa [#allocation3], 1 }
 0x3a9   :  { %920 = vsyncpa [#allocation3 + $0x1], 1 }
 0x3aa   :  { %921 = vsyncpa [#allocation6], 1 }
 0x3ab   :  { %923 = vsyncpa [#allocation6 + $0x1], 1 }
 0x3ac   :  { %924 = vsyncpa [#allocation9], 1 }
 0x3ad   :  { %925 = vsyncpa [#allocation4], 1 }
 0x3ae   :  { %927 = vsyncpa [#allocation4 + $0x1], 1 }
 0x3af   :  { %928 = vsyncpa [#allocation12], 1 }
 0x3b0   :  { %930 = vsyncpa [#allocation12 + $0x1], 1 }

</bundles_post_ra>
